<compile_context>
chip_gen: v5e
topology: v5e:2x2
jax: 0.10.0
libtpu: 0.0.40
codegen_flags: <defaults>
</compile_context>

<pallas_src>
import functools

import jax
import jax.numpy as jnp
from jax import lax
from jax.experimental import pallas as pl
from jax.experimental.pallas import tpu as pltpu


def _round_up(a, b):
    return (a + b - 1) // b * b


def _pair(v):
    return (v, v) if isinstance(v, int) else (int(v[0]), int(v[1]))


def _softplus(x):
    # Numerically stable softplus == log1p(exp(x)); both `where` branches are
    # evaluated, hence the inner clamp.
    return jnp.where(x > 20.0, x, jnp.log1p(jnp.exp(jnp.minimum(x, 20.0))))


def _fused_conv_kernel(wmu_ref, wrho_ref, epsw_ref, bmu_ref, brho_ref, epsb_ref,
                       x_ref, out_ref, *, KH, KW, Wp, dh, dw, P, compute_dtype):
    """One grid step == one image.

    x_ref   : [1, C_pad, Lpad]  flattened (row-major), zero-padded image slab
    w*_ref  : [OC_pad, K2]      K2 = KH*KW*C_pad, tap-major / channel-minor
    b*_ref  : [OC_pad, 1]
    out_ref : [1, OC_pad, P]    P = flattened output positions (lane dim)
    """
    # ---- reparameterized sample, in-kernel (no extra launch, no HBM roundtrip).
    # Recomputed per grid step: safe under a "parallel" axis, tiny for this module.
    # For sample=False / eval, pass eps == 0 and this degenerates to W_mu, b_mu.
    w_s = (wmu_ref[...] + _softplus(wrho_ref[...]) * epsw_ref[...]).astype(compute_dtype)
    b_s = bmu_ref[...] + _softplus(brho_ref[...]) * epsb_ref[...]          # f32 [OC_pad, 1]

    # ---- fused im2col: assemble the [K2, P] patch tile from the resident slab
    # with static lane-shifted windows (shift = kh*dh*Wp + kw*dw); the padded
    # slab tail guarantees every window is in-bounds.
    x_all = x_ref[0]                                     # [C_pad, Lpad]
    cols = []
    for kh in range(KH):
        for kw in range(KW):
            s = kh * dh * Wp + kw * dw                   # static lane offset
            cols.append(x_all[:, s:s + P])               # [C_pad, P]
    patches = jnp.concatenate(cols, axis=0)              # [K2, P]

    # ---- single MXU matmul + bias, f32 accumulate, lane-dense unmasked store.
    acc = jnp.dot(w_s, patches, preferred_element_type=jnp.float32)        # [OC_pad, P]
    out_ref[0] = (acc + b_s).astype(out_ref.dtype)


def stochastic_conv2d(x, w_mu, w_rho, eps_w, b_mu, b_rho, eps_b,
                      stride=1, padding=0, dilation=1,
                      compute_dtype=jnp.float32):
    """Bayes-by-backprop Conv2D forward (sample=True path).

    x: [N, C, H, W] (NCHW).  w_*: [OC, C, KH, KW] (OIHW).  b_*: [OC].
    compute_dtype: jnp.float32 (exact, default) or jnp.bfloat16 (halves the
    dominant x HBM stream on v6e/v7x; accumulation stays f32 either way).
    """
    N, C, H, W = x.shape
    OC, _, KH, KW = w_mu.shape
    sh, sw = _pair(stride)
    ph, pw = _pair(padding)
    dh, dw = _pair(dilation)

    xp = x
    if ph > 0 or pw > 0:
        xp = jnp.pad(x, ((0, 0), (0, 0), (ph, ph), (pw, pw)))
    Hp, Wp = H + 2 * ph, W + 2 * pw
    OH = (Hp - dh * (KH - 1) - 1) // sh + 1
    OW = (Wp - dw * (KW - 1) - 1) // sw + 1

    # Kernel computes a "dense" output over flat input positions p = i*Wp + j
    # (top-left corner of each receptive field); stride is applied by the cheap
    # strided slice at the end.  R = number of input rows hosting an output corner.
    R = (OH - 1) * sh + 1
    P = _round_up(R * Wp, 128)                       # lane-dense output width
    max_shift = (KH - 1) * dh * Wp + (KW - 1) * dw
    Lpad = _round_up(P + max_shift, 128)             # slab length; every window in-bounds

    sub = 16 if compute_dtype == jnp.bfloat16 else 8  # bf16 sublane packing
    C_pad = _round_up(C, sub)
    OC_pad = _round_up(OC, 8)
    K2 = KH * KW * C_pad

    # ---- x -> [N, C_pad, Lpad] flattened slab: ONE pad pass (plus the bf16 cast
    # at the source when requested) -- no materialized im2col, no stack/transpose.
    xflat = xp.reshape(N, C, Hp * Wp)
    xflat = jnp.pad(xflat, ((0, 0), (0, C_pad - C), (0, Lpad - Hp * Wp)))
    xflat = xflat.astype(compute_dtype)

    # ---- weights -> [OC_pad, K2] (tap-major, channel-minor; matches the in-kernel
    # patch assembly).  Zero-padded mu/rho/eps => padded entries sample to exactly 0.
    def prep_w(a):
        a = jnp.transpose(a, (0, 2, 3, 1)).reshape(OC, KH * KW, C)
        a = jnp.pad(a, ((0, OC_pad - OC), (0, 0), (0, C_pad - C)))
        return a.reshape(OC_pad, K2)

    def prep_b(a):
        return jnp.pad(a.reshape(OC, 1), ((0, OC_pad - OC), (0, 0)))

    wmu_p, wrho_p, epsw_p = prep_w(w_mu), prep_w(w_rho), prep_w(eps_w)
    bmu_p, brho_p, epsb_p = prep_b(b_mu), prep_b(b_rho), prep_b(eps_b)

    # ---- rough VMEM budget (double-buffered slab/output + resident weights +
    # in-kernel patch tile), with headroom; clamped to be safe on v5e/v6e/v7x.
    csz = jnp.dtype(compute_dtype).itemsize
    osz = jnp.dtype(x.dtype).itemsize
    x_blk = C_pad * Lpad * csz
    o_blk = OC_pad * P * osz
    w_bytes = 3 * OC_pad * max(K2, 128) * 4 + 3 * OC_pad * 128 * 4
    patch_bytes = (K2 + OC_pad) * P * 4
    vmem_limit = int(min(64 * 1024 * 1024,
                         max(8 * 1024 * 1024,
                             2 * (2 * x_blk + 2 * o_blk + 2 * w_bytes + patch_bytes))))

    flops = 2 * N * OC_pad * K2 * P
    bytes_accessed = (N * C_pad * Lpad * csz + N * OC_pad * P * osz
                      + 6 * OC_pad * K2 * 4)

    kernel = functools.partial(
        _fused_conv_kernel, KH=KH, KW=KW, Wp=Wp, dh=dh, dw=dw, P=P,
        compute_dtype=compute_dtype)

    out_dense = pl.pallas_call(
        kernel,
        out_shape=jax.ShapeDtypeStruct((N, OC_pad, P), x.dtype),
        grid_spec=pltpu.PrefetchScalarGridSpec(
            num_scalar_prefetch=0,
            grid=(N,),
            in_specs=[
                pl.BlockSpec((OC_pad, K2), lambda n: (0, 0)),        # W_mu   (resident)
                pl.BlockSpec((OC_pad, K2), lambda n: (0, 0)),        # W_rho  (resident)
                pl.BlockSpec((OC_pad, K2), lambda n: (0, 0)),        # eps_W  (resident)
                pl.BlockSpec((OC_pad, 1), lambda n: (0, 0)),         # b_mu   (resident)
                pl.BlockSpec((OC_pad, 1), lambda n: (0, 0)),         # b_rho  (resident)
                pl.BlockSpec((OC_pad, 1), lambda n: (0, 0)),         # eps_b  (resident)
                pl.BlockSpec((1, C_pad, Lpad), lambda n: (n, 0, 0)), # image slab (pipelined)
            ],
            out_specs=pl.BlockSpec((1, OC_pad, P), lambda n: (n, 0, 0)),
        ),
        compiler_params=pltpu.CompilerParams(
            dimension_semantics=("parallel",),   # v7x megacore splits the batch
            vmem_limit_bytes=vmem_limit,
        ),
        cost_estimate=pl.CostEstimate(
            flops=flops,
            transcendentals=N * (OC_pad * K2 + OC_pad),
            bytes_accessed=bytes_accessed),
    )(wmu_p, wrho_p, epsw_p, bmu_p, brho_p, epsb_p, xflat)

    # ---- batch-major output: only a slice (+ stride subsampling), no transpose pass.
    out = out_dense[:, :OC, :R * Wp].reshape(N, OC, R, Wp)
    return out[:, :, ::sh, ::sw][:, :, :OH, :OW]


if __name__ == "__main__":
    # Module config: in_channel=4, out_channel=8, kernel_size=3, stride=1, padding=0
    N, C, H, W = 2, 4, 16, 16
    OC, KH, KW = 8, 3, 3
    stride, padding, dilation = 1, 0, 1

    key = jax.random.PRNGKey(0)
    kx, kwm, kwr, kbm, kbr, kew, keb = jax.random.split(key, 7)

    x = jax.random.normal(kx, (N, C, H, W), dtype=jnp.float32)

    # reset_parameters(): mu ~ Normal(0.0, 0.1), rho ~ Normal(-3.0, 0.1)
    w_mu = 0.0 + 0.1 * jax.random.normal(kwm, (OC, C, KH, KW), dtype=jnp.float32)
    w_rho = -3.0 + 0.1 * jax.random.normal(kwr, (OC, C, KH, KW), dtype=jnp.float32)
    b_mu = 0.0 + 0.1 * jax.random.normal(kbm, (OC,), dtype=jnp.float32)
    b_rho = -3.0 + 0.1 * jax.random.normal(kbr, (OC,), dtype=jnp.float32)

    # rsample() noise, supplied explicitly (torch's RNG has no JAX equivalent)
    eps_w = jax.random.normal(kew, (OC, C, KH, KW), dtype=jnp.float32)
    eps_b = jax.random.normal(keb, (OC,), dtype=jnp.float32)

    out = stochastic_conv2d(x, w_mu, w_rho, eps_w, b_mu, b_rho, eps_b,
                            stride=stride, padding=padding, dilation=dilation)
    out = jax.block_until_ready(out)

    # Reference (same sampled weights) in plain JAX.
    w_s = w_mu + jnp.log1p(jnp.exp(w_rho)) * eps_w
    b_s = b_mu + jnp.log1p(jnp.exp(b_rho)) * eps_b
    ref = lax.conv_general_dilated(
        x, w_s, window_strides=(stride, stride),
        padding=[(padding, padding), (padding, padding)],
        rhs_dilation=(dilation, dilation),
        dimension_numbers=("NCHW", "OIHW", "NCHW"),
    ) + b_s[None, :, None, None]

    assert out.shape == (N, OC, H - KH + 1, W - KW + 1), out.shape
    err = float(jnp.max(jnp.abs(out - ref)))
    assert jnp.allclose(out, ref, atol=1e-4, rtol=1e-4), err
    print("KERNEL_OK")
</pallas_src>

<mosaic_0001>
module attributes {stable_mosaic.version = 11 : i64} {
  func.func @_fused_conv_kernel(%arg0: i32, %arg1: memref<8x72xf32, #tpu.memory_space<vmem>>, %arg2: memref<8x72xf32, #tpu.memory_space<vmem>>, %arg3: memref<8x72xf32, #tpu.memory_space<vmem>>, %arg4: memref<8x1xf32, #tpu.memory_space<vmem>>, %arg5: memref<8x1xf32, #tpu.memory_space<vmem>>, %arg6: memref<8x1xf32, #tpu.memory_space<vmem>>, %arg7: memref<1x8x384xf32, #tpu.memory_space<vmem>>, %arg8: memref<1x8x256xf32, #tpu.memory_space<vmem>>) attributes {dimension_semantics = [#tpu.dimension_semantics<parallel>], iteration_bounds = array<i64: 2>, scalar_prefetch = 0 : i64, scratch_operands = 0 : i64, tpu.core_type = #tpu.core_type<tc>, window_params = [{pipeline_mode = #tpu.pipeline_mode<synchronous>, transform_indices = @transform_0, window_bounds = array<i64: 8, 72>}, {pipeline_mode = #tpu.pipeline_mode<synchronous>, transform_indices = @transform_1, window_bounds = array<i64: 8, 72>}, {pipeline_mode = #tpu.pipeline_mode<synchronous>, transform_indices = @transform_2, window_bounds = array<i64: 8, 72>}, {pipeline_mode = #tpu.pipeline_mode<synchronous>, transform_indices = @transform_3, window_bounds = array<i64: 8, 1>}, {pipeline_mode = #tpu.pipeline_mode<synchronous>, transform_indices = @transform_4, window_bounds = array<i64: 8, 1>}, {pipeline_mode = #tpu.pipeline_mode<synchronous>, transform_indices = @transform_5, window_bounds = array<i64: 8, 1>}, {transform_indices = @transform_6, window_bounds = array<i64: 1, 8, 384>}, {transform_indices = @transform_7, window_bounds = array<i64: 1, 8, 256>}]} {
    %c0 = arith.constant 0 : index
    %c0_0 = arith.constant 0 : index
    %0 = vector.load %arg1[%c0, %c0_0] : memref<8x72xf32, #tpu.memory_space<vmem>>, vector<8x72xf32>
    %c0_1 = arith.constant 0 : index
    %c0_2 = arith.constant 0 : index
    %1 = vector.load %arg2[%c0_1, %c0_2] : memref<8x72xf32, #tpu.memory_space<vmem>>, vector<8x72xf32>
    %cst = arith.constant 2.000000e+01 : f32
    %2 = vector.broadcast %cst : f32 to vector<8x72xf32>
    %3 = arith.cmpf ogt, %1, %2 : vector<8x72xf32>
    %cst_3 = arith.constant 2.000000e+01 : f32
    %4 = vector.broadcast %cst_3 : f32 to vector<8x72xf32>
    %5 = arith.minimumf %1, %4 : vector<8x72xf32>
    %6 = math.exp %5 : vector<8x72xf32>
    %7 = math.log1p %6 : vector<8x72xf32>
    %8 = arith.select %3, %1, %7 : vector<8x72xi1>, vector<8x72xf32>
    %c0_4 = arith.constant 0 : index
    %c0_5 = arith.constant 0 : index
    %9 = vector.load %arg3[%c0_4, %c0_5] : memref<8x72xf32, #tpu.memory_space<vmem>>, vector<8x72xf32>
    %10 = arith.mulf %8, %9 : vector<8x72xf32>
    %11 = arith.addf %0, %10 : vector<8x72xf32>
    %c0_6 = arith.constant 0 : index
    %c0_7 = arith.constant 0 : index
    %12 = vector.load %arg4[%c0_6, %c0_7] : memref<8x1xf32, #tpu.memory_space<vmem>>, vector<8x1xf32>
    %c0_8 = arith.constant 0 : index
    %c0_9 = arith.constant 0 : index
    %13 = vector.load %arg5[%c0_8, %c0_9] : memref<8x1xf32, #tpu.memory_space<vmem>>, vector<8x1xf32>
    %cst_10 = arith.constant 2.000000e+01 : f32
    %14 = vector.broadcast %cst_10 : f32 to vector<8x1xf32>
    %15 = arith.cmpf ogt, %13, %14 : vector<8x1xf32>
    %cst_11 = arith.constant 2.000000e+01 : f32
    %16 = vector.broadcast %cst_11 : f32 to vector<8x1xf32>
    %17 = arith.minimumf %13, %16 : vector<8x1xf32>
    %18 = math.exp %17 : vector<8x1xf32>
    %19 = math.log1p %18 : vector<8x1xf32>
    %20 = arith.select %15, %13, %19 : vector<8x1xi1>, vector<8x1xf32>
    %c0_12 = arith.constant 0 : index
    %c0_13 = arith.constant 0 : index
    %21 = vector.load %arg6[%c0_12, %c0_13] : memref<8x1xf32, #tpu.memory_space<vmem>>, vector<8x1xf32>
    %22 = arith.mulf %20, %21 : vector<8x1xf32>
    %23 = arith.addf %12, %22 : vector<8x1xf32>
    %c0_14 = arith.constant 0 : index
    %c0_15 = arith.constant 0 : index
    %c0_16 = arith.constant 0 : index
    %24 = vector.load %arg7[%c0_14, %c0_15, %c0_16] : memref<1x8x384xf32, #tpu.memory_space<vmem>>, vector<1x8x384xf32>
    %25 = vector.shape_cast %24 : vector<1x8x384xf32> to vector<8x384xf32>
    %26 = vector.extract_strided_slice %25 {offsets = [0, 0], sizes = [8, 256], strides = [1, 1]} : vector<8x384xf32> to vector<8x256xf32>
    %27 = vector.extract_strided_slice %25 {offsets = [0, 1], sizes = [8, 256], strides = [1, 1]} : vector<8x384xf32> to vector<8x256xf32>
    %28 = vector.extract_strided_slice %25 {offsets = [0, 2], sizes = [8, 256], strides = [1, 1]} : vector<8x384xf32> to vector<8x256xf32>
    %29 = vector.extract_strided_slice %25 {offsets = [0, 16], sizes = [8, 256], strides = [1, 1]} : vector<8x384xf32> to vector<8x256xf32>
    %30 = vector.extract_strided_slice %25 {offsets = [0, 17], sizes = [8, 256], strides = [1, 1]} : vector<8x384xf32> to vector<8x256xf32>
    %31 = vector.extract_strided_slice %25 {offsets = [0, 18], sizes = [8, 256], strides = [1, 1]} : vector<8x384xf32> to vector<8x256xf32>
    %32 = vector.extract_strided_slice %25 {offsets = [0, 32], sizes = [8, 256], strides = [1, 1]} : vector<8x384xf32> to vector<8x256xf32>
    %33 = vector.extract_strided_slice %25 {offsets = [0, 33], sizes = [8, 256], strides = [1, 1]} : vector<8x384xf32> to vector<8x256xf32>
    %34 = vector.extract_strided_slice %25 {offsets = [0, 34], sizes = [8, 256], strides = [1, 1]} : vector<8x384xf32> to vector<8x256xf32>
    %35 = tpu.concatenate %26, %27, %28, %29, %30, %31, %32, %33, %34 in 0 : vector<8x256xf32>, vector<8x256xf32>, vector<8x256xf32>, vector<8x256xf32>, vector<8x256xf32>, vector<8x256xf32>, vector<8x256xf32>, vector<8x256xf32>, vector<8x256xf32> -> vector<72x256xf32>
    %cst_17 = arith.constant dense<0.000000e+00> : vector<8x256xf32>
    %36 = tpu.matmul %11, %35, %cst_17 {dimension_numbers = #tpu.dot_dimension_numbers<[1], [0], [0], [1], [0, 0, 1, 1], [], []>} : vector<8x72xf32>, vector<72x256xf32>, vector<8x256xf32> -> vector<8x256xf32>
    %37 = vector.broadcast %23 : vector<8x1xf32> to vector<8x256xf32>
    %38 = arith.addf %36, %37 : vector<8x256xf32>
    %c0_18 = arith.constant 0 : index
    %c0_19 = arith.constant 0 : index
    %c0_20 = arith.constant 0 : index
    %39 = vector.load %arg8[%c0_18, %c0_19, %c0_20] : memref<1x8x256xf32, #tpu.memory_space<vmem>>, vector<1x8x256xf32>
    %40 = vector.shape_cast %39 : vector<1x8x256xf32> to vector<8x256xf32>
    %41 = vector.shape_cast %38 : vector<8x256xf32> to vector<1x8x256xf32>
    tpu.vector_store %arg8[%c0_18, %c0_19, %c0_20], %41 {strides = array<i32>} : memref<1x8x256xf32, #tpu.memory_space<vmem>>, vector<1x8x256xf32>,
    return
  }
  func.func @transform_0(%arg0: i32) -> (i32, i32) {
    %c0_i32 = arith.constant 0 : i32
    %c0_i32_0 = arith.constant 0 : i32
    %c0_i32_1 = arith.constant 0 : i32
    return %c0_i32, %c0_i32_0 : i32, i32
  }
  func.func @transform_1(%arg0: i32) -> (i32, i32) {
    %c0_i32 = arith.constant 0 : i32
    %c0_i32_0 = arith.constant 0 : i32
    %c0_i32_1 = arith.constant 0 : i32
    return %c0_i32, %c0_i32_0 : i32, i32
  }
  func.func @transform_2(%arg0: i32) -> (i32, i32) {
    %c0_i32 = arith.constant 0 : i32
    %c0_i32_0 = arith.constant 0 : i32
    %c0_i32_1 = arith.constant 0 : i32
    return %c0_i32, %c0_i32_0 : i32, i32
  }
  func.func @transform_3(%arg0: i32) -> (i32, i32) {
    %c0_i32 = arith.constant 0 : i32
    %c0_i32_0 = arith.constant 0 : i32
    %c0_i32_1 = arith.constant 0 : i32
    return %c0_i32, %c0_i32_0 : i32, i32
  }
  func.func @transform_4(%arg0: i32) -> (i32, i32) {
    %c0_i32 = arith.constant 0 : i32
    %c0_i32_0 = arith.constant 0 : i32
    %c0_i32_1 = arith.constant 0 : i32
    return %c0_i32, %c0_i32_0 : i32, i32
  }
  func.func @transform_5(%arg0: i32) -> (i32, i32) {
    %c0_i32 = arith.constant 0 : i32
    %c0_i32_0 = arith.constant 0 : i32
    %c0_i32_1 = arith.constant 0 : i32
    return %c0_i32, %c0_i32_0 : i32, i32
  }
  func.func @transform_6(%arg0: i32) -> (i32, i32, i32) {
    %c0_i32 = arith.constant 0 : i32
    %c0_i32_0 = arith.constant 0 : i32
    %c0_i32_1 = arith.constant 0 : i32
    return %arg0, %c0_i32, %c0_i32_0 : i32, i32, i32
  }
  func.func @transform_7(%arg0: i32) -> (i32, i32, i32) {
    %c0_i32 = arith.constant 0 : i32
    %c0_i32_0 = arith.constant 0 : i32
    %c0_i32_1 = arith.constant 0 : i32
    return %arg0, %c0_i32, %c0_i32_0 : i32, i32, i32
  }
}

</mosaic_0001>

<bundles_post_ra>
// kernel: tpu_custom_call.1
= control target key start
LH: loop header
LB: loop body
LE: loop exit
PB: predicated region body
PF: predicated region fallthrough
CT: control target
= control target key end

     0   :  { %12 = vsyncpa [#allocation3], 0  ;;  %s1004_s0 = inlined_call_operand.vmem [shape: f32[8,72], index: 0, kind: input, shape index: {}]   ;;  %s1005_s1 = inlined_call_operand.vmem [shape: f32[8,72], index: 1, kind: input, shape index: {}]   ;;  %s1006_s2 = inlined_call_operand.vmem [shape: f32[8,72], index: 2, kind: input, shape index: {}]   ;;  %s1007_s3 = inlined_call_operand.vmem [shape: f32[8,1], index: 3, kind: input, shape index: {}]   ;;  %s1008_s4 = inlined_call_operand.vmem [shape: f32[8,1], index: 4, kind: input, shape index: {}]   ;;  %s1009_s5 = inlined_call_operand.vmem [shape: f32[8,1], index: 5, kind: input, shape index: {}]   ;;  %s1010_s6 = inlined_call_operand.hbm [shape: f32[2,8,384], index: 6, kind: input, shape index: {}]   ;;  %s1011_s7 = inlined_call_operand.hbm [shape: f32[2,8,256], index: 7, kind: output, shape index: {}]  }
   0x1   :  { %14 = vsyncpa [#allocation3 + $0x1], 0 }
   0x2   :  { %15 = vsyncpa [#allocation4], 0 }
   0x3   :  { %17 = vsyncpa [#allocation4 + $0x1], 0  ;;  %s836_s24 = smov 0   ;;  %s838_s25 = smov 0  }
   0x4   :  { %s840_s26 = smov 0   ;;  %s842_s27 = smov 0  }
   0x5 LB: > { %1013 = sst [smem:[#allocation8_spill]] %s781_s26  ;;  %s857_s28 = sadd.s32 4294967295, %s785_s27   ;;  %s785_s27 = sphi %s842_s27, %s1025_s27   ;;  %s781_s26 = sphi %s840_s26, %s1022_s26   ;;  %s777_s25 = sphi %s838_s25, %s1024_s25   ;;  %s773_s24 = sphi %s836_s24, %s1023_s24  }
   0x6   : > { %s567_s29 = sadd.s32 4294967294, %s785_s27   ;;  %s861_s30 = sadd.s32 1, %s785_s27  }
   0x7   : > { %s156_s8 = sadd.s32 1, %s781_s26  ;;  %s153_s9 = ssub.s32 %s785_s27, %s861_s30 }
   0x8   : > { %p163_p0 = scmp.ne.s32.totalorder %s781_s26, %s777_s25  ;;  %p154_p1 = scmp.eq.s32.totalorder %s153_s9, 0 }
   0x9   : > { %p164_p2 = scmp.eq.s32.totalorder %s785_s27, 0  ;;  %p169_p3 = scmp.ne.s32.totalorder %s777_s25, %s773_s24 }
   0xa   : > { %p170_p4 = scmp.eq.s32.totalorder %s857_s28, 0  ;;  %p193_p7 = scmp.eq.s32.totalorder %s857_s28, 1 }
   0xb   : > { %s873_s10 = scalar_select %p154_p1, %s781_s26, %s156_s8  }
   0xc   : > { %p165_p5 = por %p164_p2, %p163_p0  ;;  %p875_p6 = por %p170_p4, %p169_p3 }
   0xd   : > { %1014 = sst [smem:[#allocation9_spill]] %s873_s10  ;;  %p199_p8 = scmp.eq.s32.totalorder %s567_s29, 1 }
   0xe   : > { %p569_p9 = scmp.ge.s32.totalorder %s785_s27, 2  ;;  %p596_p10 = scmp.lt.s32.totalorder %s785_s27, 2 }
   0xf   : > { %p882_p11 = por %p193_p7, %p163_p0  ;;  %p886_p12 = por %p199_p8, %p169_p3 }
  0x10   : > { %s237_s14 = sand.u32 1, %s781_s26   ;;  %s582_s15 = smul.u32 24, %s785_s27 }
  0x11   : > { %s581_s16 = smul.u32 24, %s237_s14  ;;  %p895_p13 = pnand %p596_p10, %p165_p5 }
  0x12   : > { %s246_s19 = scalar_lea.hbm %s1010_s6, %s582_s15  ;;  %s238_s29 = scalar_lea.sflag [#allocation3], %s237_s14 }
  0x13   : > { %s248_s21 = sshll.u32 %s246_s19, 4  ;;  %s241_s22 = scalar_lea.vmem [#allocation2], %s581_s16  ;;  %s249_s21 = int_to_ptr.hbm [resolvable:$true] %s248_s21 }
  0x14   : > { %s250_s23 = sshll.u32 %s241_s22, 4  ;;  %s689_s8 = sshra.s32 %s249_s21, 4  ;;  %s251_s23 = int_to_ptr.vmem [resolvable:$true] %s250_s23  ;;  %s690_s8 = int_to_ptr.hbm [resolvable:$true] %s689_s8 }
  0x15   : > { %s691_s9 = scalar_lea.hbm %s690_s8, 24  ;;  %p693_p1 = pneg %p895_p13 }
  0x16   : > { %p692_p0 = scmp.ne.s32.totalorder %s690_s8, %s691_s9  ;;  %s696_s18 = scalar_lea.hbm %s1010_s6, 48 }
  0x17   : > { %p697_p4 = scmp.lt.s32.totalorder %s690_s8, %s1010_s6  ;;  %p698_p5 = scmp.lt.s32.totalorder %s696_s18, %s691_s9 }
  0x18   : > { %p694_p2 = pnand %p693_p1, %p692_p0 }
  0x19   : > { %p699_p7 = por %p698_p5, %p697_p4 }
  0x1a   : > { %p695_p3 = pneg %p694_p2 }
  0x1c   : > { %p700_p8 = pnand %p699_p7, %p695_p3 }
  0x1e   : > { %703 = shalt.err (!%p700_p8)
}
  0x1f   : > { %591 = dma.hbm_to_vmem [thread:$0]  (!%p895_p13), %s249_s21, 384, %s251_s23, %s238_s29  }
  0x20   : > { %p571_p10 = scmp.ge.s32.totalorder %s785_s27, 1  ;;  %p255_p0 = scmp.lt.s32.totalorder %s785_s27, 3 }
  0x22   : > { %p256_p1 = pnand %p571_p10, %p255_p0 }
  0x23   : > { %s912_s14 = sand.u32 (!%p256_p1), 1, %s777_s25  }
  0x24   : > { %259 = sbr.rel (%p256_p1) target bundleno = 335 (0x14f), region = 48  ;;  %s262_s10 = scalar_lea.sflag (!%p256_p1), [#allocation3], %s912_s14 }
  0x25   : > { %s583_s26 = smul.u32 (!%p256_p1), 24, %s912_s14 }
  0x27   : > { %s265_s16 = scalar_lea.vmem (!%p256_p1), [#allocation2], %s583_s26 }
  0x29   : > { %764 = dma.done.wait (%p875_p6), %s262_s10, 384  }
  0x2a   : > { %766 = vsyncadd (%p875_p6), %s262_s10, 4294966912  ;;  %v920_v0 = vld [vmem:[%s265_s16] sm:$0xff]  ;;  %v922_v1 = vld [vmem:[%s265_s16 + $0x8] sm:$0xff]  ;;  %s787_s19 = smov 95   ;;  %s788_s20 = smov 94   ;;  %vm424_vm0 = vcmask 769024  }
  0x2b   : > { %v644_v2 = vpack.i.bf16 %v922_v1, %v920_v0  ;;  %s789_s21 = smov 96   ;;  %v337_v3 = vld [vmem:[%s265_s16 + $0x10] sm:$0xff]  ;;  %s790_s22 = smov 110   ;;  %v929_v4 = vld [vmem:[%s1005_s1] sm:$0xff]  ;;  %vm413_vm1 = vcmask 777216   ;;  %vm402_vm2 = vcmask 785408  }
  0x2c   : > { %s791_s11 = smov 111   ;;  %s792_s23 = smov 112   ;;  %v300_v6 = vmin.f32 %v929_v4, 20.0  ;;  %v935_v8 = vld [vmem:[%s1008_s4] sm:$0xff]  ;;  %v795_v37 = vmov 0   ;;  %vm380_vm3 = vcmask 908288  }
  0x2d   : > { %645 = vrot.lane.b32.xlu1 %v644_v2, %s787_s19  ;;  %640 = vrot.lane.b32.xlu0 %v644_v2, %s788_s20  ;;  %s793_s29 = smov 126   ;;  %s794_s8 = smov 127   ;;  %v319_v9 = vmin.f32 %v935_v8, 20.0  ;;  %vm391_vm5 = vcmask 900096   ;;  %vm318_vm6 = vcmp.gt.f32.partialorder %v935_v8, 20.0  ;;  %v332_v48 = vld [vmem:[%s1009_s5] sm:$0xff] }
  0x2e   : > { %650 = vrot.lane.b32.xlu2 %v644_v2, %s789_s21  ;;  %v301_v7 = vmul.f32 1.442695, %v300_v6  ;;  %679 = vset.pattern.permute.xlu1 %v795_v37  ;;  %v316_v55 = vld [vmem:[%s1007_s3] sm:$0xff]  ;;  %vm369_vm7 = vcmask 916480   ;;  %vm299_vm9 = vcmp.gt.f32.partialorder %v929_v4, 20.0  ;;  %vm358_vm10 = vcmask 1031168  }
  0x2f   : > { %v320_v10 = vmul.f32 1.442695, %v319_v9  ;;  %680 = vset.pattern.permute.xlu0 %v795_v37  ;;  %vm347_vm11 = vcmask 1039360   ;;  %vm434_vm12 = vcmask 588800   ;;  %s481_s10 = scalar_lea.sflag [#allocation4], %s912_s14 }
  0x30   : > { %681 = vpow2.f32 %v301_v7 }
  0x31   : > { %683 = vpow2.f32 %v320_v10 }
  0x35   : > { %411 = vrot.lane.b32.xlu1 %v337_v3, %s787_s19  ;;  %422 = vrot.lane.b32.xlu0 %v337_v3, %s788_s20 }
  0x36   : > { %400 = vrot.lane.b32.xlu2 %v337_v3, %s789_s21  ;;  %v682_v22 = vpop.eup %681  ;;  %s739_s21 = scalar_lea.hbm %s1011_s7, 32 }
  0x37   : > { %v684_v24 = vpop.eup %683  ;;  %v303_v30 = vadd.f32 1.0, %v682_v22  ;;  %v306_v40 = vmul.f32 -0.5, %v682_v22  ;;  %v309_v58 = vand.u32 2147483647, %v682_v22 }
  0x38   : > { %v322_v26 = vadd.f32 1.0, %v684_v24  ;;  %v325_v32 = vmul.f32 -0.5, %v684_v24  ;;  %v328_v34 = vand.u32 2147483647, %v684_v24 }
  0x39   : > { %v307_v54 = vadd.f32 1.0, %v306_v40  ;;  %vm310_vm8 = vcmp.lt.f32.partialorder %v309_v58, 0.0004427343 }
  0x3a   : > { %685 = vlog2.f32 %v322_v26  ;;  %v326_v38 = vadd.f32 1.0, %v325_v32  ;;  %vm944_vm4 = vcmp.lt.f32.partialorder %v328_v34, 0.0004427343 }
  0x3b   : > { %687 = vlog2.f32 %v303_v30  ;;  %v308_v62 = vmul.f32 %v682_v22, %v307_v54 }
  0x3c   : > { %v327_v45 = vmul.f32 %v684_v24, %v326_v38 }
  0x3d   : > { %655 = vrot.lane.b32.xlu0 %v644_v2, %s790_s22  ;;  %389 = vrot.lane.b32.xlu1 %v337_v3, %s790_s22 }
  0x3e   : > { %660 = vrot.lane.b32.xlu2 %v644_v2, %s791_s11 }
  0x40   : > { %v686_v39 = vpop.eup %685 }
  0x41   : > { %v324_v44 = vmul.f32 0.6931472, %v686_v39  ;;  %v688_v57 = vpop.eup %687 }
  0x42   : > { %v305_v61 = vmul.f32 0.6931472, %v688_v57 }
  0x43   : > { %v330_v51 = vsel %vm944_vm4, %v327_v45, %v324_v44 }
  0x44   : > { %v331_v56 = vsel %vm318_vm6, %v935_v8, %v330_v51  ;;  %v311_v9 = vsel %vm310_vm8, %v308_v62, %v305_v61 }
  0x45   : > { %378 = vrot.lane.b32.xlu0 %v337_v3, %s791_s11  ;;  %665 = vrot.lane.b32.xlu1 %v644_v2, %s792_s23  ;;  %v333_v59 = vmul.f32 %v332_v48, %v331_v56 }
  0x46   : > { %367 = vrot.lane.b32.xlu2 %v337_v3, %s792_s23  ;;  %s572_s23 = sshll.u32 %s912_s14, 4 }
  0x47   : > { %v334_v60 = vadd.f32 %v333_v59, %v316_v55  ;;  %s296_s17 = scalar_lea.vmem [#allocation5], %s572_s23 }
  0x48   : > { %s494_s18 = sshll.u32 %s296_s17, 4  ;;  %s495_s18 = int_to_ptr.vmem [resolvable:$true] %s494_s18 }
  0x4d   : > { %670 = vrot.lane.b32.xlu0 %v644_v2, %s793_s29  ;;  %356 = vrot.lane.b32.xlu1 %v337_v3, %s793_s29  ;;  %s580_s29 = sshll.u32 %s857_s28, 4 }
  0x4e   : > { %675 = vrot.lane.b32.xlu2 %v644_v2, %s794_s8  ;;  %s492_s15 = scalar_lea.hbm %s1011_s7, %s580_s29 }
  0x4f   : > { %s496_s26 = sshll.u32 %s492_s15, 4  ;;  %s497_s26 = int_to_ptr.hbm [resolvable:$true] %s496_s26 }
  0x50   : > { %s733_s16 = sshra.s32 %s497_s26, 4  ;;  %s734_s16 = int_to_ptr.hbm [resolvable:$true] %s733_s16 }
  0x51   : > { %s735_s28 = scalar_lea.hbm %s734_s16, 16  ;;  %p740_p3 = scmp.lt.s32.totalorder %s734_s16, %s1011_s7 }
  0x52   : > { %p736_p6 = scmp.ne.s32.totalorder %s734_s16, %s735_s28  ;;  %p741_p4 = scmp.lt.s32.totalorder %s739_s21, %s735_s28 }
  0x54   : > { %p737_p13 = pnand %p736_p6, %p882_p11  ;;  %p742_p5 = por %p741_p4, %p740_p3 }
  0x55   : > { %345 = vrot.lane.b32.xlu0 %v337_v3, %s794_s8  ;;  %431 = vperm.xlu1 %679, %v334_v60  }
  0x56   : > { %p738_p2 = pneg %p737_p13 }
  0x58   : > { %p743_p7 = pnand %p742_p5, %p738_p2 }
  0x88   : > { %v651_v5 = vpop.permute.xlu2 %650 }
  0x89   : > { %v653_v12 = vunpack.i.h.bf16 %v651_v5  ;;  %v652_v13 = vunpack.i.l.bf16 %v651_v5 }
  0x8b   : > { %v403_v23 = vsel %vm402_vm2, %v652_v13, %v653_v12 }
  0x90   : > { %v401_v11 = vpop.permute.xlu2 %400 }
  0x91   : > { %v404_v33 = vsel %vm402_vm2, %v653_v12, %v401_v11  ;;  %v312_v11 = vsel %vm299_vm9, %v929_v4, %v311_v9  ;;  %v313_v12 = vld [vmem:[%s1006_s2] sm:$0xff] }
  0x98   : > { %v661_v25 = vpop.permute.xlu2 %660 }
  0x99   : > { %v663_v35 = vunpack.i.h.bf16 %v661_v25  ;;  %v662_v36 = vunpack.i.l.bf16 %v661_v25 }
  0x9b   : > { %v381_v49 = vsel %vm380_vm3, %v662_v36, %v663_v35 }
  0x9f   : > { %v646_v14 = vpop.permute.xlu1 %645  ;;  %v641_v15 = vpop.permute.xlu0 %640 }
  0xa0   : > { %v648_v16 = vunpack.i.h.bf16 %v646_v14  ;;  %v647_v17 = vunpack.i.l.bf16 %v646_v14  ;;  %v643_v18 = vunpack.i.h.bf16 %v641_v15  ;;  %v642_v19 = vunpack.i.l.bf16 %v641_v15  ;;  %v368_v50 = vpop.permute.xlu2 %367 }
  0xa2   : > { %v425_v20 = vsel %vm424_vm0, %v642_v19, %v643_v18  ;;  %v414_v21 = vsel %vm413_vm1, %v647_v17, %v648_v16  ;;  %v314_v19 = vmul.f32 %v313_v12, %v312_v11 }
  0xa3   : > { %445 = vmatpush.msra.mxu0 %v425_v20  ;;  %v297_v20 = vld [vmem:[%s1004_s0] sm:$0xff] }
  0xa5   : > { %446 = vmatpush.msra.mxu0 %v414_v21 }
  0xa7   : > { %v412_v27 = vpop.permute.xlu1 %411  ;;  %v423_v28 = vpop.permute.xlu0 %422  ;;  %447 = vmatpush.msra.mxu0 %v403_v23  ;;  %v315_v23 = vadd.f32 %v314_v19, %v297_v20 }
  0xa8   : > { %v426_v29 = vsel %vm424_vm0, %v643_v18, %v423_v28  ;;  %v415_v31 = vsel %vm413_vm1, %v648_v16, %v412_v27  ;;  %v676_v10 = vpop.permute.xlu2 %675 }
  0xa9   : > { %465 = vmatpush.msra.mxu1 %v426_v29  ;;  %v678_v13 = vunpack.i.h.bf16 %v676_v10  ;;  %v677_v14 = vunpack.i.l.bf16 %v676_v10 }
  0xab   : > { %466 = vmatpush.msra.mxu1 %v415_v31  ;;  %v348_v22 = vsel %vm347_vm11, %v677_v14, %v678_v13 }
  0xad   : > { %467 = vmatpush.msra.mxu1 %v404_v33 }
  0xaf   : > { %v656_v42 = vpop.permute.xlu0 %655  ;;  %v390_v43 = vpop.permute.xlu1 %389 }
  0xb0   : > { %v658_v46 = vunpack.i.h.bf16 %v656_v42  ;;  %v657_v47 = vunpack.i.l.bf16 %v656_v42 }
  0xb2   : > { %v392_v52 = vsel %vm391_vm5, %v657_v47, %v658_v46  ;;  %v393_v53 = vsel %vm391_vm5, %v658_v46, %v390_v43 }
  0xb3   : > { %448 = vmatpush.msra.mxu0 %v392_v52  ;;  %468 = vmatpush.msra.mxu1 %v393_v53 }
  0xb5   : > { %449 = vmatpush.msra.mxu0 %v381_v49 }
  0xb7   : > { %v379_v63 = vpop.permute.xlu0 %378  ;;  %v666_v2 = vpop.permute.xlu1 %665 }
  0xb8   : > { %v668_v3 = vunpack.i.h.bf16 %v666_v2  ;;  %v667_v5 = vunpack.i.l.bf16 %v666_v2  ;;  %v382_v6 = vsel %vm380_vm3, %v663_v35, %v379_v63 }
  0xb9   : > { %469 = vmatpush.msra.mxu1 %v382_v6 }
  0xba   : > { %v371_v7 = vsel %vm369_vm7, %v668_v3, %v368_v50  ;;  %v370_v8 = vsel %vm369_vm7, %v667_v5, %v668_v3 }
  0xbb   : > { %470 = vmatpush.msra.mxu1 %v371_v7  ;;  %450 = vmatpush.msra.mxu0 %v370_v8 }
  0xbf   : > { %v671_v15 = vpop.permute.xlu0 %670  ;;  %v357_v16 = vpop.permute.xlu1 %356 }
  0xc0   : > { %v673_v17 = vunpack.i.h.bf16 %v671_v15  ;;  %v672_v18 = vunpack.i.l.bf16 %v671_v15 }
  0xc2   : > { %v359_v21 = vsel %vm358_vm10, %v672_v18, %v673_v17  ;;  %v360_v4 = vsel %vm358_vm10, %v673_v17, %v357_v16 }
  0xc3   : > { %451 = vmatpush.msra.mxu0 %v359_v21  ;;  %471 = vmatpush.msra.mxu1 %v360_v4 }
  0xc5   : > { %452 = vmatpush.msra.mxu0 %v348_v22 }
  0xc7   : > { %v346_v24 = vpop.permute.xlu0 %345  ;;  %453 = vmatpush.msra.mxu0 %v920_v0  ;;  %v432_v26 = vpop.permute.xlu1 %431 }
  0xc8   : > { %v349_v25 = vsel %vm347_vm11, %v678_v13, %v346_v24  ;;  %573 = vmatmul.msk.f32.vlgmr.msra.gmra.mxu0 %vm434_vm12, %v315_v23 }
  0xc9   : > { %472 = vmatpush.msra.mxu1 %v349_v25 }
  0xcb   : > { %473 = vmatpush.msra.mxu1 %v922_v1 }
  0xcc   : > { %574 = vmatmul.msk.f32.vlgmr.msra.gmra.mxu1 %vm434_vm12, %v315_v23 }
 0x145   : > { %v455_v27 = vpop.f32.mrf.mxu0 }
 0x146   : > { %v456_v28 = vadd.f32 %v455_v27, %v432_v26 }
 0x148   : > { %478 = vst [vmem:[%s296_s17] sm:$0xff] %v456_v28 }
 0x149   : > { %v475_v0 = vpop.f32.mrf.mxu1 }
 0x14a   : > { %v476_v29 = vadd.f32 %v475_v0, %v432_v26 }
 0x14c   : > { %479 = vst [vmem:[%s296_s17 + $0x8] sm:$0xff] %v476_v29 }
 0x14d   : > { %746 = shalt.err (!%p743_p7)
}
 0x14e   : > { %586 = dma.vmem_to_hbm [thread:$0]  (%p882_p11), %s495_s18, 256, %s497_s26, %s481_s10  }
 0x14f PF: > { %s508_s14 = sand.u32 1, %s773_s24   ;;  %p593_p8 = pnand %p569_p9, %p886_p12 }
 0x150   : > { %s509_s23 = scalar_lea.sflag [#allocation4], %s508_s14 }
 0x151   : > { %p594_p10 = pneg %p593_p8 }
 0x153   : > { %768 = dma.done.wait (%p594_p10), %s509_s23, 256  }
 0x154   : > { %770 = vsyncadd (%p594_p10), %s509_s23, 4294967040  ;;  %s1021_s29 = sld [smem:[#allocation8_spill]]  ;;  %p20_p0 = scmp.ge.s32.totalorder %s861_s30, 4  }
 0x155   : > { %s1022_s26 = sld [smem:[#allocation9_spill]]  ;;  %s1023_s24 = smov %s777_s25 }
 0x156   : > { %s1025_s27 = smov %s861_s30  ;;  %22 = sbr.rel (!%p20_p0) target bundleno = 5 (0x5), region = 93 }
 0x15a   : > { %s1024_s25 = smov %s1021_s29 }
 0x15b   :  { %515 = vsyncpa [#allocation3], 1 }
 0x15c   :  { %517 = vsyncpa [#allocation3 + $0x1], 1 }
 0x15d   :  { %518 = vsyncpa [#allocation4], 1 }
 0x15e   :  { %520 = vsyncpa [#allocation4 + $0x1], 1 }

</bundles_post_ra>
